<compile_context>
chip_gen: v7x
topology: tpu7x:2x2x1
jax: 0.10.0
libtpu: 0.0.40
codegen_flags: <defaults>
</compile_context>

<pallas_src>
import jax
import jax.numpy as jnp
from jax import lax
from jax.experimental import pallas as pl
from jax.experimental.pallas import tpu as pltpu


def _general_attention_kernel(dec_ref, enc_ref, mask_ref, w_ref, out_ref):
    # Per grid step (one batch element b):
    #   dec_ref : (1, 1, H)  decoder last hidden state (row b)
    #   enc_ref : (1, S, H)  encoder outputs           (row b)
    #   mask_ref: (1, 1, S)  nonzero == masked out     (row b)
    #   w_ref   : (H, H)     Linear weight (PyTorch out x in), VMEM-resident
    #   out_ref : (1, 1, H)  context vector            (row b)
    dec = dec_ref[0]            # (1, H)
    enc = enc_ref[0]            # (S, H), native dtype (bf16 stays bf16)
    mask = mask_ref[0]          # (1, S)
    w = w_ref[...]              # (H, H)

    # d = dec @ W.T  — contract dim1 x dim1 (NT form): MXU, no in-kernel transpose.
    d = lax.dot_general(dec, w, (((1,), (1,)), ((), ())),
                        preferred_element_type=jnp.float32)           # (1, H) f32

    # scores[s] = sum_h d[h] * enc[s, h]  — NT matmul on the MXU.
    scores = lax.dot_general(d.astype(enc.dtype), enc,
                             (((1,), (1,)), ((), ())),
                             preferred_element_type=jnp.float32)      # (1, S) f32

    # masked_fill_(src_mask != 0, -1e10)
    scores = jnp.where(mask != 0, jnp.float32(-1e10), scores)

    # softmax over S in f32; reciprocal on the EUP slot (effectively free).
    m = jnp.max(scores, axis=-1, keepdims=True)
    e = jnp.exp(scores - m)
    p = e * pl.reciprocal(jnp.sum(e, axis=-1, keepdims=True), approx=True)  # (1, S)

    # context = p @ enc  — NN matmul on the MXU.
    ctx = jnp.dot(p.astype(enc.dtype), enc,
                  preferred_element_type=jnp.float32)                 # (1, H) f32

    out_ref[0] = ctx.astype(out_ref.dtype)


def general_attention(decoder_hidden, encoder_output, src_mask, weight):
    """decoder_hidden: (L, B, H), encoder_output: (S, B, H), src_mask: (S, B),
    weight: (H, H).  Returns the context vector with shape (1, B, H)."""
    L, B, H = decoder_hidden.shape
    S = encoder_output.shape[0]

    dec3 = decoder_hidden[-1][:, None, :]                  # (B, 1, H)   tiny
    # One-time batch-first layout change of the big tensor so each grid step
    # streams a contiguous (S, H) tile.
    enc_bf = jnp.transpose(encoder_output, (1, 0, 2))      # (B, S, H)
    mask3 = jnp.transpose(src_mask, (1, 0))[:, None, :]    # (B, 1, S)   tiny, native dtype

    ctx = pl.pallas_call(
        _general_attention_kernel,
        out_shape=jax.ShapeDtypeStruct((B, 1, H), encoder_output.dtype),
        grid_spec=pltpu.PrefetchScalarGridSpec(
            num_scalar_prefetch=0,
            grid=(B,),
            in_specs=[
                pl.BlockSpec((1, 1, H), lambda b: (b, 0, 0)),   # decoder state
                pl.BlockSpec((1, S, H), lambda b: (b, 0, 0)),   # encoder tile (pipelined)
                pl.BlockSpec((1, 1, S), lambda b: (b, 0, 0)),   # mask
                pl.BlockSpec((H, H), lambda b: (0, 0)),         # weight, resident
            ],
            out_specs=pl.BlockSpec((1, 1, H), lambda b: (b, 0, 0)),
        ),
        compiler_params=pltpu.CompilerParams(
            dimension_semantics=("parallel",),     # shard batch steps across TCs (v7x)
            vmem_limit_bytes=64 * 1024 * 1024,
        ),
    )(dec3, enc_bf, mask3, weight)

    return jnp.transpose(ctx, (1, 0, 2))                   # (1, B, H)


def reference(decoder_hidden, encoder_output, src_mask, weight):
    """Pure-JAX reference mirroring the PyTorch forward."""
    dec = decoder_hidden[-1][None]                         # (1, B, H)
    d = dec @ weight.T                                     # (1, B, H)
    att = jnp.matmul(jnp.transpose(d, (1, 0, 2)),
                     jnp.transpose(encoder_output, (1, 2, 0)))   # (B, 1, S)
    att = jnp.transpose(att, (2, 0, 1))                    # (S, B, 1)
    att = jnp.where(src_mask[:, :, None] != 0, -1e10, att)
    att = jax.nn.softmax(att, axis=0)
    ctx = jnp.sum(att * encoder_output, axis=0)            # (B, H)
    return ctx[None]                                       # (1, B, H)


if __name__ == "__main__":
    L, B, S, H = 2, 4, 16, 128
    key = jax.random.PRNGKey(0)
    k1, k2, k3, k4 = jax.random.split(key, 4)

    decoder_hidden = jax.random.normal(k1, (L, B, H), dtype=jnp.float32)
    encoder_output = jax.random.normal(k2, (S, B, H), dtype=jnp.float32)
    # mask: nonzero entries are masked out; keep at least one unmasked position
    # per batch element.  Narrow int dtype (no f32 upcast needed).
    src_mask = (jax.random.uniform(k3, (S, B)) > 0.7).astype(jnp.int32)
    src_mask = src_mask.at[0, :].set(0)
    # deterministic Linear(H, H, bias=False) weight (PyTorch out x in layout)
    weight = jax.random.normal(k4, (H, H), dtype=jnp.float32) * (1.0 / jnp.sqrt(H))

    out = general_attention(decoder_hidden, encoder_output, src_mask, weight)
    out = jax.block_until_ready(out)

    ref = reference(decoder_hidden, encoder_output, src_mask, weight)
    assert out.shape == (1, B, H)
    assert jnp.allclose(out, ref, atol=2e-3, rtol=2e-3), float(jnp.max(jnp.abs(out - ref)))

    print("KERNEL_OK")
</pallas_src>

<mosaic_0001>
module attributes {stable_mosaic.version = 11 : i64} {
  func.func @_general_attention_kernel(%arg0: i32, %arg1: memref<1x1x128xf32, #tpu.memory_space<vmem>>, %arg2: memref<1x16x128xf32, #tpu.memory_space<vmem>>, %arg3: memref<1x1x16xi32, #tpu.memory_space<vmem>>, %arg4: memref<128x128xf32, #tpu.memory_space<vmem>>, %arg5: memref<1x1x128xf32, #tpu.memory_space<vmem>>) attributes {dimension_semantics = [#tpu.dimension_semantics<parallel>], iteration_bounds = array<i64: 4>, scalar_prefetch = 0 : i64, scratch_operands = 0 : i64, tpu.core_type = #tpu.core_type<tc>, window_params = [{transform_indices = @transform_0, window_bounds = array<i64: 1, 1, 128>}, {transform_indices = @transform_1, window_bounds = array<i64: 1, 16, 128>}, {transform_indices = @transform_2, window_bounds = array<i64: 1, 1, 16>}, {pipeline_mode = #tpu.pipeline_mode<synchronous>, transform_indices = @transform_3, window_bounds = array<i64: 128, 128>}, {transform_indices = @transform_4, window_bounds = array<i64: 1, 1, 128>}]} {
    %c0 = arith.constant 0 : index
    %c0_0 = arith.constant 0 : index
    %c0_1 = arith.constant 0 : index
    %0 = vector.load %arg1[%c0, %c0_0, %c0_1] : memref<1x1x128xf32, #tpu.memory_space<vmem>>, vector<1x1x128xf32>
    %1 = vector.shape_cast %0 : vector<1x1x128xf32> to vector<1x128xf32>
    %c0_2 = arith.constant 0 : index
    %c0_3 = arith.constant 0 : index
    %c0_4 = arith.constant 0 : index
    %2 = vector.load %arg2[%c0_2, %c0_3, %c0_4] : memref<1x16x128xf32, #tpu.memory_space<vmem>>, vector<1x16x128xf32>
    %3 = vector.shape_cast %2 : vector<1x16x128xf32> to vector<16x128xf32>
    %c0_5 = arith.constant 0 : index
    %c0_6 = arith.constant 0 : index
    %c0_7 = arith.constant 0 : index
    %4 = vector.load %arg3[%c0_5, %c0_6, %c0_7] : memref<1x1x16xi32, #tpu.memory_space<vmem>>, vector<1x1x16xi32>
    %5 = vector.shape_cast %4 : vector<1x1x16xi32> to vector<1x16xi32>
    %c0_8 = arith.constant 0 : index
    %c0_9 = arith.constant 0 : index
    %6 = vector.load %arg4[%c0_8, %c0_9] : memref<128x128xf32, #tpu.memory_space<vmem>>, vector<128x128xf32>
    %cst = arith.constant dense<0.000000e+00> : vector<1x128xf32>
    %7 = tpu.matmul %1, %6, %cst {dimension_numbers = #tpu.dot_dimension_numbers<[1], [1], [0], [0], [0, 0, 1, 0], [], []>} : vector<1x128xf32>, vector<128x128xf32>, vector<1x128xf32> -> vector<1x128xf32>
    %cst_10 = arith.constant dense<0.000000e+00> : vector<1x16xf32>
    %8 = tpu.matmul %7, %3, %cst_10 {dimension_numbers = #tpu.dot_dimension_numbers<[1], [1], [0], [0], [0, 0, 1, 0], [], []>} : vector<1x128xf32>, vector<16x128xf32>, vector<1x16xf32> -> vector<1x16xf32>
    %c0_i32 = arith.constant 0 : i32
    %9 = vector.broadcast %c0_i32 : i32 to vector<1x16xi32>
    %10 = arith.cmpi ne, %5, %9 : vector<1x16xi32>
    %cst_11 = arith.constant -1.000000e+10 : f32
    %11 = vector.broadcast %cst_11 : f32 to vector<1x16xf32>
    %12 = arith.select %10, %11, %8 : vector<1x16xi1>, vector<1x16xf32>
    %cst_12 = arith.constant dense<0xFF800000> : vector<1xf32>
    %13 = vector.multi_reduction <maximumf>, %12, %cst_12 [1] : vector<1x16xf32> to vector<1xf32>
    %14 = vector.shape_cast %13 : vector<1xf32> to vector<1x1xf32>
    %15 = vector.broadcast %14 : vector<1x1xf32> to vector<1x16xf32>
    %16 = arith.subf %12, %15 : vector<1x16xf32>
    %17 = math.exp %16 : vector<1x16xf32>
    %cst_13 = arith.constant dense<0.000000e+00> : vector<1xf32>
    %18 = vector.multi_reduction <add>, %17, %cst_13 [1] : vector<1x16xf32> to vector<1xf32>
    %19 = vector.shape_cast %18 : vector<1xf32> to vector<1x1xf32>
    %20 = tpu.reciprocal %19 {approx = true} : vector<1x1xf32> -> vector<1x1xf32>
    %21 = vector.broadcast %20 : vector<1x1xf32> to vector<1x16xf32>
    %22 = arith.mulf %17, %21 : vector<1x16xf32>
    %cst_14 = arith.constant dense<0.000000e+00> : vector<1x128xf32>
    %23 = tpu.matmul %22, %3, %cst_14 {dimension_numbers = #tpu.dot_dimension_numbers<[1], [0], [0], [1], [0, 0, 1, 1], [], []>} : vector<1x16xf32>, vector<16x128xf32>, vector<1x128xf32> -> vector<1x128xf32>
    %c0_15 = arith.constant 0 : index
    %c0_16 = arith.constant 0 : index
    %c0_17 = arith.constant 0 : index
    %24 = vector.load %arg5[%c0_15, %c0_16, %c0_17] : memref<1x1x128xf32, #tpu.memory_space<vmem>>, vector<1x1x128xf32>
    %25 = vector.shape_cast %24 : vector<1x1x128xf32> to vector<1x128xf32>
    %26 = vector.shape_cast %23 : vector<1x128xf32> to vector<1x1x128xf32>
    tpu.vector_store %arg5[%c0_15, %c0_16, %c0_17], %26 {strides = array<i32>} : memref<1x1x128xf32, #tpu.memory_space<vmem>>, vector<1x1x128xf32>,
    return
  }
  func.func @transform_0(%arg0: i32) -> (i32, i32, i32) {
    %c0_i32 = arith.constant 0 : i32
    %c0_i32_0 = arith.constant 0 : i32
    %c0_i32_1 = arith.constant 0 : i32
    return %arg0, %c0_i32, %c0_i32_0 : i32, i32, i32
  }
  func.func @transform_1(%arg0: i32) -> (i32, i32, i32) {
    %c0_i32 = arith.constant 0 : i32
    %c0_i32_0 = arith.constant 0 : i32
    %c0_i32_1 = arith.constant 0 : i32
    return %arg0, %c0_i32, %c0_i32_0 : i32, i32, i32
  }
  func.func @transform_2(%arg0: i32) -> (i32, i32, i32) {
    %c0_i32 = arith.constant 0 : i32
    %c0_i32_0 = arith.constant 0 : i32
    %c0_i32_1 = arith.constant 0 : i32
    return %arg0, %c0_i32, %c0_i32_0 : i32, i32, i32
  }
  func.func @transform_3(%arg0: i32) -> (i32, i32) {
    %c0_i32 = arith.constant 0 : i32
    %c0_i32_0 = arith.constant 0 : i32
    %c0_i32_1 = arith.constant 0 : i32
    return %c0_i32, %c0_i32_0 : i32, i32
  }
  func.func @transform_4(%arg0: i32) -> (i32, i32, i32) {
    %c0_i32 = arith.constant 0 : i32
    %c0_i32_0 = arith.constant 0 : i32
    %c0_i32_1 = arith.constant 0 : i32
    return %arg0, %c0_i32, %c0_i32_0 : i32, i32, i32
  }
}

</mosaic_0001>

<bundles_post_ra>
// kernel: tpu_custom_call.1
= control target key start
LH: loop header
LB: loop body
LE: loop exit
PB: predicated region body
PF: predicated region fallthrough
CT: control target
= control target key end

     0   :  { %s1375_s0 = inlined_call_operand.hbm [shape: f32[4,1,128], index: 0, kind: input, shape index: {}]   ;;  %s1376_s1 = inlined_call_operand.hbm [shape: f32[4,16,128], index: 1, kind: input, shape index: {}]   ;;  %s1377_s2 = inlined_call_operand.hbm [shape: s32[4,1,16], index: 2, kind: input, shape index: {}]   ;;  %s1378_s3 = inlined_call_operand.hbm [shape: f32[128,128], index: 3, kind: input, shape index: {}]   ;;  %s1379_s4 = inlined_call_operand.hbm [shape: f32[4,1,128], index: 4, kind: output, shape index: {}]  }
   0x1   :  { %1394 = sst [smem:[#allocation17_spill]] %s1376_s1 }
   0x2   :  { %9 = vsyncpa [#allocation3], 0 }
   0x3   :  { %11 = vsyncpa [#allocation3 + $0x1], 0 }
   0x4   :  { %12 = vsyncpa [#allocation6], 0 }
   0x5   :  { %14 = vsyncpa [#allocation6 + $0x1], 0 }
   0x6   :  { %15 = vsyncpa [#allocation9], 0 }
   0x7   :  { %16 = vsyncpa [#allocation4], 0 }
   0x8   :  { %18 = vsyncpa [#allocation4 + $0x1], 0  ;;  %s1094_s15 = smov 0   ;;  %s1096_s16 = smov 0  }
   0x9   :  { %s1098_s17 = smov 0   ;;  %s1100_s18 = smov 0  }
   0xa LB: > { %1395 = sst [smem:[#allocation15_spill]] %s1053_s17  ;;  %s1115_s19 = sadd.s32 1, %s1057_s18   ;;  %s1057_s18 = sphi %s1100_s18, %s1423_s18   ;;  %s1053_s17 = sphi %s1098_s17, %s1420_s17   ;;  %s1049_s16 = sphi %s1096_s16, %s1422_s16   ;;  %s1045_s15 = sphi %s1094_s15, %s1421_s15  }
   0xb   : > { %s31_s20 = sadd.s32 1, %s1053_s17  ;;  %s28_s21 = ssub.s32 %s1057_s18, %s1115_s19 }
   0xc   : > { %p1380_p0 = scmp.ne.s32.totalorder %s1053_s17, %s1049_s16  ;;  %p29_p1 = scmp.eq.s32.totalorder %s28_s21, 0 }
   0xd   : > { %p39_p2 = scmp.eq.s32.totalorder %s1057_s18, 0  ;;  %p820_p4 = scmp.lt.s32.totalorder %s1057_s18, 4 }
   0xe   : > { %s1124_s22 = scalar_select %p29_p1, %s1053_s17, %s31_s20  }
   0xf   : > { %p40_p3 = por %p39_p2, %p1380_p0  ;;  %s1131_s23 = sand.u32 1, %s1053_s17  }
  0x10   : > { %1396 = sst [smem:[#allocation16_spill]] %s1124_s22  ;;  %s197_s24 = sand.u32 1, %s1057_s18  }
  0x11   : > { %s675_s25 = sshll.u32 %s1131_s23, 4  ;;  %p1135_p5 = pnand %p820_p4, %p40_p3 }
  0x12   : > { %s686_s27 = sshll.u32 %s1057_s18, 8  ;;  %s1398_s1 = sld [smem:[#allocation17_spill]] }
  0x13   : > { %s1397_s26 = scalar_select %p1135_p5, 1, 0 }
  0x14   : > { %s201_s5 = scalar_lea.vmem [#allocation5], %s675_s25  ;;  %s1147_s7 = scalar_lea.sflag [#allocation6], %s197_s24 }
  0x15   : > { %s208_s6 = sshll.u32 %s201_s5, 4  ;;  %p1153_p7 = pneg %p1135_p5  ;;  %s1145_s6 = int_to_ptr.vmem [resolvable:$true] %s208_s6 }
  0x17   : > { %s1399_s9 = scalar_select %p1153_p7, 1, 0 }
  0x18   : > { %s1143_s30 = scalar_lea.hbm %s1398_s1, %s686_s27  ;;  %s870_s12 = scalar_lea.hbm %s1398_s1, 1024 }
  0x19   : > { %s865_s8 = scalar_lea.hbm %s1143_s30, 256  ;;  %p871_p10 = scmp.lt.u32.totalorder %s1143_s30, %s1398_s1 }
  0x1a   : > { %p866_p6 = scmp.ne.s32.totalorder %s1143_s30, %s865_s8  ;;  %p872_p11 = scmp.lt.u32.totalorder %s870_s12, %s865_s8 }
  0x1b   : > { %p874_p13 = scmp.lt.u32.totalorder %s865_s8, %s1143_s30 }
  0x1c   : > { %p868_p8 = pnand %p1153_p7, %p866_p6  ;;  %p873_p12 = por %p872_p11, %p871_p10 }
  0x1e   : > { %p869_p9 = pneg %p868_p8  ;;  %p875_p1 = por %p874_p13, %p873_p12 }
  0x20   : > { %p876_p2 = pnand %p875_p1, %p869_p9 }
  0x22   : > { %879 = shalt.err (!%p876_p2)
}
  0x23   : > { %s880_s20 = scalar_lea.vmem %s1145_s6, 256  ;;  %s1059_s21 = smov [#allocation5]  }
  0x24   : > { %p881_p3 = scmp.ne.s32.totalorder %s1145_s6, %s880_s20  ;;  %s885_s24 = sshll.u32 %s1059_s21, 4  ;;  %s886_s24 = int_to_ptr.vmem [resolvable:$false] %s885_s24 }
  0x25   : > { %s887_s25 = scalar_lea.vmem %s886_s24, 512  ;;  %p888_p8 = scmp.lt.s32.totalorder %s1145_s6, %s886_s24 }
  0x26   : > { %p883_p4 = pnand %p881_p3, %p1153_p7  ;;  %p889_p0 = scmp.lt.s32.totalorder %s887_s25, %s880_s20 }
  0x28   : > { %p884_p6 = pneg %p883_p4  ;;  %p890_p10 = por %p889_p0, %p888_p8 }
  0x2a   : > { %p891_p11 = pnand %p890_p10, %p884_p6 }
  0x2c   : > { %894 = shalt.err (!%p891_p11)
}
  0x2d   : > { %s1381_s27 = smov 128   ;;  %s1383_s28 = smov 8  }
  0x2e   : > { %811 = dma.hbm_to_vmem [thread:$0]  (!%p1135_p5), %s1143_s30, 256, %s1145_s6, %s1147_s7, %s1381_s27, %s1381_s27, %s1383_s28  }
  0x2f   : > { %s1181_s29 = sadd.s32 4294967295, %s1057_s18   ;;  %s670_s5 = sadd.s32 4294967294, %s1057_s18  }
  0x30   : > { %p44_p0 = scmp.ne.s32.totalorder %s1049_s16, %s1045_s15  ;;  %p1384_p9 = scmp.eq.s32.totalorder %s1181_s29, 0 }
  0x31   : > { %p141_p12 = scmp.eq.s32.totalorder %s1181_s29, 3  ;;  %p147_p13 = scmp.eq.s32.totalorder %s670_s5, 3 }
  0x32   : > { %p1190_p1 = por %p1384_p9, %p44_p0  ;;  %p671_p2 = scmp.ge.s32.totalorder %s1057_s18, 1 }
  0x33   : > { %p1401_p3 = scmp.ne.s32.totalorder %s1053_s17, %s1049_s16  ;;  %p1202_p6 = por %p147_p13, %p44_p0 }
  0x34   : > { %s1400_s8 = scalar_select %p1190_p1, 1, 0 }
  0x35   : > { %p1198_p4 = por %p141_p12, %p1401_p3  ;;  %p154_p8 = scmp.lt.s32.totalorder %s1057_s18, 5 }
  0x36   : > { %s1403_s6 = scalar_select %p1202_p6, 1, 0 }
  0x37   : > { %s1402_s30 = scalar_select %p1198_p4, 1, 0 }
  0x38   : > { %p1207_p10 = pnand %p671_p2, %p154_p8  ;;  %s1062_s11 = smov [#allocation8]  }
  0x39   : > { %s166_s12 = sshll.u32 %s1062_s11, 4  ;;  %s1382_s13 = sshll.u32 %s1057_s18, 4  ;;  %s1211_s12 = int_to_ptr.vmem [resolvable:$true] %s166_s12 }
  0x3a   : > { %s1404_s10 = scalar_select %p1207_p10, 1, 0 }
  0x3b   : > { %p801_p11 = pneg %p1207_p10  ;;  %s1221_s21 = scalar_lea.hbm %s1375_s0, %s1382_s13 }
  0x3c   : > { %s183_s24 = scalar_lea.vmem [#allocation2], %s1131_s23  ;;  %s181_s11 = scalar_lea.sflag [#allocation3], %s1131_s23 }
  0x3d   : > { %s190_s25 = sshll.u32 %s183_s24, 4  ;;  %p1226_p0 = pnand %p801_p11, %p1384_p9  ;;  %s191_s25 = int_to_ptr.vmem [resolvable:$true] %s190_s25 }
  0x3e   : > { %s895_s27 = scalar_lea.hbm %s1221_s21, 16  ;;  %s900_s13 = scalar_lea.hbm %s1375_s0, 64 }
  0x3f   : > { %s1405_s5 = scalar_select %p1226_p0, 1, 0 }
  0x40   : > { %p896_p12 = scmp.ne.s32.totalorder %s1221_s21, %s895_s27  ;;  %p901_p3 = scmp.lt.u32.totalorder %s1221_s21, %s1375_s0 }
  0x41   : > { %p902_p8 = scmp.lt.u32.totalorder %s900_s13, %s895_s27  ;;  %p904_p9 = scmp.lt.u32.totalorder %s895_s27, %s1221_s21 }
  0x42   : > { %p898_p13 = pnand %p896_p12, %p1153_p7 }
  0x43   : > { %p903_p11 = por %p902_p8, %p901_p3 }
  0x44   : > { %p899_p2 = pneg %p898_p13 }
  0x45   : > { %p905_p6 = por %p904_p9, %p903_p11 }
  0x47   : > { %p906_p4 = pnand %p905_p6, %p899_p2 }
  0x49   : > { %909 = shalt.err (!%p906_p4)
}
  0x4a   : > { %s910_s24 = scalar_lea.vmem %s191_s25, 16  ;;  %s1063_s22 = smov [#allocation2]  }
  0x4b   : > { %p911_p1 = scmp.ne.s32.totalorder %s191_s25, %s910_s24  ;;  %s915_s17 = sshll.u32 %s1063_s22, 4  ;;  %s916_s17 = int_to_ptr.vmem [resolvable:$false] %s915_s17 }
  0x4c   : > { %s917_s14 = scalar_lea.vmem %s916_s17, 32  ;;  %p918_p10 = scmp.lt.s32.totalorder %s191_s25, %s916_s17 }
  0x4d   : > { %p913_p12 = pnand %p911_p1, %p1153_p7  ;;  %p919_p0 = scmp.lt.s32.totalorder %s917_s14, %s910_s24 }
  0x4f   : > { %p914_p13 = pneg %p913_p12  ;;  %p920_p5 = por %p919_p0, %p918_p10 }
  0x51   : > { %p921_p3 = pnand %p920_p5, %p914_p13 }
  0x53   : > { %924 = shalt.err (!%p921_p3)
}
  0x54   : > { %p1406_p8 = scmp.ne.s32.totalorder %s1397_s26, 0  ;;  %s925_s28 = scalar_lea.hbm %s1378_s3, 2048 }
  0x55   : > { %p926_p9 = scmp.ne.s32.totalorder %s1378_s3, %s925_s28  ;;  %p1407_p1 = scmp.ne.s32.totalorder %s1405_s5, 0 }
  0x56   : > { %808 = dma.hbm_to_vmem [thread:$0]  (!%p1406_p8), %s1221_s21, 16, %s191_s25, %s181_s11  }
  0x57   : > { %p927_p4 = pneg %p1407_p1  ;;  %p932_p5 = scmp.lt.u32.totalorder %s925_s28, %s1378_s3 }
  0x59   : > { %p928_p6 = pnand %p927_p4, %p926_p9 }
  0x5b   : > { %p929_p2 = pneg %p928_p6 }
  0x5d   : > { %p934_p10 = pnand %p932_p5, %p929_p2 }
  0x5f   : > { %937 = shalt.err (!%p934_p10)
}
  0x60   : > { %s938_s21 = scalar_lea.vmem %s1211_s12, 2048  ;;  %p946_p13 = scmp.lt.s32.totalorder %s1211_s12, %s1211_s12 }
  0x61   : > { %p939_p0 = scmp.ne.s32.totalorder %s1211_s12, %s938_s21  ;;  %p947_p3 = scmp.lt.s32.totalorder %s938_s21, %s938_s21 }
  0x63   : > { %p941_p11 = pnand %p939_p0, %p927_p4  ;;  %p948_p8 = por %p947_p3, %p946_p13 }
  0x65   : > { %p942_p12 = pneg %p941_p11 }
  0x67   : > { %p949_p7 = pnand %p948_p8, %p942_p12 }
  0x69   : > { %952 = shalt.err (!%p949_p7)
}
  0x6a   : > { %s1408_s25 = smov 8   ;;  %s1409_s11 = smov 128  }
  0x6b   : > { %804 = dma.hbm_to_vmem [thread:$0]  (!%p1407_p1), %s1378_s3, 2048, %s1211_s12, [#allocation9], %s1409_s11, %s1409_s11, %s1408_s25  }
  0x6c   : > { %s1410_s1 = sshll.u32 %s1057_s18, 4  ;;  %s221_s5 = scalar_lea.vmem [#allocation7], %s1131_s23 }
  0x6d   : > { %s1277_s13 = scalar_lea.hbm %s1377_s2, %s1410_s1  ;;  %s228_s20 = sshll.u32 %s221_s5, 4  ;;  %s229_s20 = int_to_ptr.vmem [resolvable:$true] %s228_s20 }
  0x6e   : > { %s953_s17 = scalar_lea.hbm %s1277_s13, 16  ;;  %p1411_p8 = scmp.ne.s32.totalorder %s1399_s9, 0 }
  0x6f   : > { %p954_p7 = scmp.ne.s32.totalorder %s1277_s13, %s953_s17  ;;  %s958_s21 = scalar_lea.hbm %s1377_s2, 64 }
  0x70   : > { %p959_p1 = scmp.lt.u32.totalorder %s1277_s13, %s1377_s2  ;;  %p960_p6 = scmp.lt.u32.totalorder %s958_s21, %s953_s17 }
  0x71   : > { %p956_p9 = pnand %p954_p7, %p1411_p8  ;;  %p962_p5 = scmp.lt.u32.totalorder %s953_s17, %s1277_s13 }
  0x72   : > { %p961_p2 = por %p960_p6, %p959_p1 }
  0x73   : > { %p957_p4 = pneg %p956_p9 }
  0x74   : > { %p963_p10 = por %p962_p5, %p961_p2 }
  0x76   : > { %p964_p0 = pnand %p963_p10, %p957_p4 }
  0x78   : > { %967 = shalt.err (!%p964_p0)
}
  0x79   : > { %s968_s23 = scalar_lea.vmem %s229_s20, 16  ;;  %s1064_s24 = smov [#allocation7]  }
  0x7a   : > { %p969_p11 = scmp.ne.s32.totalorder %s229_s20, %s968_s23  ;;  %s973_s14 = sshll.u32 %s1064_s24, 4  ;;  %s974_s14 = int_to_ptr.vmem [resolvable:$false] %s973_s14 }
  0x7b   : > { %s975_s1 = scalar_lea.vmem %s974_s14, 32  ;;  %p976_p3 = scmp.lt.s32.totalorder %s229_s20, %s974_s14 }
  0x7c   : > { %p971_p12 = pnand %p969_p11, %p1411_p8  ;;  %p977_p7 = scmp.lt.s32.totalorder %s975_s1, %s968_s23 }
  0x7e   : > { %p972_p13 = pneg %p971_p12  ;;  %p978_p9 = por %p977_p7, %p976_p3 }
  0x80   : > { %p979_p1 = pnand %p978_p9, %p972_p13 }
  0x82   : > { %982 = shalt.err (!%p979_p1)
}
  0x83   : > { %p1412_p6 = scmp.ne.s32.totalorder %s1397_s26, 0  ;;  %p1413_p4 = scmp.ne.s32.totalorder %s1404_s10, 0 }
  0x84   : > { %s1301_s9 = sand.u32 (!%p1413_p4), 1, %s1049_s16   ;;  %p1414_p8 = scmp.ne.s32.totalorder (!%p1413_p4), %s1400_s8, 0 }
  0x85   : > { %814 = dma.hbm_to_vmem [thread:$0]  (!%p1412_p6), %s1277_s13, 16, %s229_s20, %s1147_s7  }
  0x86   : > { %237 = sbr.rel (%p1413_p4) target bundleno = 1179 (0x49b), region = 36  ;;  %s240_s27 = scalar_lea.sflag (!%p1413_p4), [#allocation3], %s1301_s9 }
  0x87   : > { %s242_s28 = scalar_lea.vmem (!%p1413_p4), [#allocation2], %s1301_s9 }
  0x8d   : > { %1028 = dma.done.wait (%p1414_p8), %s240_s27, 16  }
  0x8e   : > { %1030 = vsyncadd (%p1414_p8), %s240_s27, 4294967280  ;;  %s247_s26 = sand.u32 1, %s1181_s29   ;;  %s680_s7 = sshll.u32 %s1301_s9, 4 }
  0x8f   : > { %s248_s10 = scalar_lea.sflag [#allocation6], %s247_s26  ;;  %s251_s13 = scalar_lea.vmem [#allocation5], %s680_s7 }
  0x90   : > { %1032 = dma.done.wait (%p1414_p8), %s248_s10, 272  }
  0x91   : > { %1034 = vsyncadd (%p1414_p8), %s248_s10, 4294967024  ;;  %s259_s5 = scalar_lea.vmem [#allocation7], %s1301_s9  ;;  %p1415_p2 = scmp.eq.s32.totalorder %s1181_s29, 0 }
  0x93   : > { %1036 = dma.done.wait (%p1415_p2), [#allocation9], 2048   ;;  %p1416_p5 = pmov %p1415_p2 }
  0x94   : > { %v1065_v0 = vmov 0.0|0.0   ;;  %vm1066_vm0 = vmmov 0   ;;  %v1067_v1 = vmov 0.0   ;;  %v299_v2 = vld [vmem:[#allocation8] sm:$0xff]  ;;  %v300_v3 = vld [vmem:[#allocation8 + $0x8] sm:$0xff]  ;;  %v301_v5 = vld [vmem:[#allocation8 + $0x10] sm:$0xff] }
  0x95   : > { %1038 = vsyncadd (%p1416_p5), [#allocation9], 4294965248  ;;  %759 = vmatprep.subr.bf16.mxu0 %v1065_v0  ;;  %742 = vmatprep.mubr.msk.f32.mxu0 %vm1066_vm0, %v1067_v1  ;;  %v760_v4 = vpack.c.bf16 %v300_v3, %v299_v2  ;;  %v302_v6 = vld [vmem:[#allocation8 + $0x18] sm:$0xff]  ;;  %v303_v11 = vld [vmem:[#allocation8 + $0x20] sm:$0xff]  ;;  %vm457_vm2 = vcmask 122880   ;;  %vm469_vm3 = vcmask 130048  }
  0x96   : > { %783 = vmatprep.subr.bf16.mxu1 %v1065_v0  ;;  %749 = vmatprep.mubr.msk.f32.mxu1 %vm1066_vm0, %v1067_v1  ;;  %v296_v7 = vld [vmem:[%s251_s13] sm:$0xff]  ;;  %v297_v8 = vld [vmem:[%s251_s13 + $0x8] sm:$0xff]  ;;  %v763_v9 = vpack.c.bf16 %v302_v6, %v301_v5  ;;  %s294_s8 = scalar_lea.vmem [#allocation10], %s1301_s9  ;;  %s683_s17 = sshll.u32 %s1181_s29, 4 }
  0x97   : > { %761 = vmatpush3.bf16.xpose.msra.mxu0 %v760_v4  ;;  %v784_v10 = vpack.c.bf16 %v297_v8, %v296_v7  ;;  %v304_v12 = vld [vmem:[#allocation8 + $0x28] sm:$0xff]  ;;  %v305_v14 = vld [vmem:[#allocation8 + $0x30] sm:$0xff]  ;;  %v306_v15 = vld [vmem:[#allocation8 + $0x38] sm:$0xff]  ;;  %s557_s20 = sshll.u32 %s294_s8, 4  ;;  %s1334_s21 = scalar_lea.hbm %s1379_s4, %s683_s17  ;;  %s1329_s20 = int_to_ptr.vmem [resolvable:$true] %s557_s20 }
  0x98   : > { %762 = vmatprep.subr.bf16.mxu0 %v1065_v0  ;;  %v766_v13 = vpack.c.bf16 %v304_v12, %v303_v11  ;;  %v769_v16 = vpack.c.bf16 %v306_v15, %v305_v14  ;;  %v307_v17 = vld [vmem:[#allocation8 + $0x40] sm:$0xff]  ;;  %v308_v18 = vld [vmem:[#allocation8 + $0x48] sm:$0xff]  ;;  %v309_v20 = vld [vmem:[#allocation8 + $0x50] sm:$0xff]  ;;  %s545_s25 = scalar_lea.sflag [#allocation4], %s1301_s9  ;;  %s983_s11 = scalar_lea.vmem %s1329_s20, 16 }
  0x99   : > { %785 = vmatpush3.bf16.xpose.msra.mxu1 %v784_v10  ;;  %v772_v19 = vpack.c.bf16 %v308_v18, %v307_v17  ;;  %v310_v21 = vld [vmem:[#allocation8 + $0x58] sm:$0xff]  ;;  %v311_v23 = vld [vmem:[#allocation8 + $0x60] sm:$0xff]  ;;  %v312_v24 = vld [vmem:[#allocation8 + $0x68] sm:$0xff]  ;;  %p984_p10 = scmp.ne.s32.totalorder %s1329_s20, %s983_s11  ;;  %p1417_p0 = scmp.ne.s32.totalorder %s1402_s30, 0 }
  0x9a   : > { %786 = vmatprep.subr.bf16.mxu1 %v1065_v0  ;;  %v775_v22 = vpack.c.bf16 %v310_v21, %v309_v20  ;;  %v778_v25 = vpack.c.bf16 %v312_v24, %v311_v23  ;;  %v313_v26 = vld [vmem:[#allocation8 + $0x70] sm:$0xff]  ;;  %v314_v27 = vld [vmem:[#allocation8 + $0x78] sm:$0xff]  ;;  %s1068_s29 = smov [#allocation10]  }
  0x9b   : > { %v781_v28 = vpack.c.bf16 %v314_v27, %v313_v26  ;;  %v295_v29 = vld [vmem:[%s242_s28] sm:$0x1]  ;;  %p985_p11 = pnand %p984_p10, %p1417_p0  ;;  %s987_s23 = sshll.u32 %s1068_s29, 4  ;;  %s988_s23 = int_to_ptr.vmem [resolvable:$false] %s987_s23 }
  0x9c   : > { %v298_v32 = vld [vmem:[%s259_s5] sm:$0x1]  ;;  %s989_s24 = scalar_lea.vmem %s988_s23, 32  ;;  %p990_p13 = scmp.lt.s32.totalorder %s1329_s20, %s988_s23 }
  0x9d   : > { %vm455_vm1 = vcmp.ne.s32.totalorder %v298_v32, 0  ;;  %p986_p12 = pneg %p985_p11  ;;  %p991_p3 = scmp.lt.s32.totalorder %s989_s24, %s983_s11 }
  0x9f   : > { %764 = vmatpush3.bf16.xpose.msra.mxu0 %v763_v9  ;;  %p992_p7 = por %p991_p3, %p990_p13 }
  0xa0   : > { %765 = vmatprep.subr.bf16.mxu0 %v1065_v0 }
  0xa1   : > { %p993_p9 = pnand %p992_p7, %p986_p12 }
  0xa7   : > { %767 = vmatpush3.bf16.xpose.msra.mxu0 %v766_v13 }
  0xa8   : > { %768 = vmatprep.subr.bf16.mxu0 %v1065_v0 }
  0xaf   : > { %770 = vmatpush3.bf16.xpose.msra.mxu0 %v769_v16 }
  0xb0   : > { %771 = vmatprep.subr.bf16.mxu0 %v1065_v0 }
  0xb7   : > { %773 = vmatpush3.bf16.xpose.msra.mxu0 %v772_v19 }
  0xb8   : > { %774 = vmatprep.subr.bf16.mxu0 %v1065_v0 }
  0xbf   : > { %776 = vmatpush3.bf16.xpose.msra.mxu0 %v775_v22 }
  0xc0   : > { %777 = vmatprep.subr.bf16.mxu0 %v1065_v0 }
  0xc7   : > { %779 = vmatpush3.bf16.xpose.msra.mxu0 %v778_v25 }
  0xc8   : > { %780 = vmatprep.subr.bf16.mxu0 %v1065_v0 }
  0xcf   : > { %782 = vmatpush3.bf16.xpose.msra.mxu0 %v781_v28 }
  0xd6   : > { %743 = vmatmul.mubr.f32.vlgmr.msra.gmra.mrb[0].mxu0 %v295_v29 }
 0x1a9   : > { %v381_v30 = vpop.f32.mrb[0].mxu0 }
 0x1aa   : > { %v744_v31 = vpop.f32.mrb[1].mxu0  ;;  %750 = vmatmul.mubr.f32.vlgmr.msra.gmra.mrb[0].mxu1 %v381_v30 }
 0x1ab   : > { %788 = vmatpush3.bf16.msra.mxu1 %v784_v10  ;;  %756 = vmatprep.mubr.msk.f32.mxu1 %vm1066_vm0, %v1067_v1 }
 0x27d   : > { %v451_v33 = vpop.f32.mrb[0].mxu1 }
 0x27e   : > { %v456_v34 = vsel %vm455_vm1, -1e+10, %v451_v33  ;;  %v751_v35 = vpop.f32.mrb[1].mxu1 }
 0x27f   : > { %v458_v36 = vsel %vm457_vm2, %v456_v34, -inf }
 0x280   : > { %459 = vmax.xlane.f32.xlu0 %v458_v36 }
 0x30d   : > { %v460_v37 = vpop.xlane.xlu0 %459 }
 0x30e   : > { %v461_v38 = vsub.f32 %v456_v34, %v460_v37 }
 0x310   : > { %v462_v39 = vmul.f32 1.442695, %v461_v38 }
 0x312   : > { %861 = vpow2.f32 %v462_v39 }
 0x31c   : > { %v862_v40 = vpop.eup %861 }
 0x31d   : > { %v464_v41 = vsel %vm457_vm2, %v862_v40, 0.0 }
 0x31e   : > { %465 = vadd.xlane.f32.xlu0 %v464_v41 }
 0x3ab   : > { %v466_v42 = vpop.xlane.xlu0 %465 }
 0x3ac   : > { %863 = vrcp.f32 %v466_v42 }
 0x3b6   : > { %v864_v43 = vpop.eup %863 }
 0x3b7   : > { %v468_v44 = vmul.f32 %v864_v43, %v862_v40 }
 0x3b9   : > { %757 = vmatmul.mubr.msk.f32.vlgmr.msra.gmra.mrb[2].mxu1 %vm469_vm3, %v468_v44 }
 0x48c   : > { %v539_v45 = vpop.f32.mrb[2].mxu1 }
 0x48d   : > { %543 = vst [vmem:[%s294_s8] sm:$0x1] %v539_v45  ;;  %v758_v46 = vpop.f32.mrb[3].mxu1 }
 0x48e   : > { %996 = shalt.err (!%p993_p9)
}
 0x48f   : > { %s997_s14 = scalar_lea.hbm %s1334_s21, 16  ;;  %s1001_s27 = scalar_lea.hbm %s1379_s4, 64 }
 0x490   : > { %p998_p1 = scmp.ne.s32.totalorder %s1334_s21, %s997_s14  ;;  %p1002_p8 = scmp.lt.u32.totalorder %s1334_s21, %s1379_s4 }
 0x491   : > { %p1003_p2 = scmp.lt.u32.totalorder %s1001_s27, %s997_s14  ;;  %p1005_p10 = scmp.lt.u32.totalorder %s997_s14, %s1334_s21 }
 0x492   : > { %p999_p6 = pnand %p998_p1, %p1417_p0 }
 0x493   : > { %p1004_p5 = por %p1003_p2, %p1002_p8 }
 0x494   : > { %p1000_p4 = pneg %p999_p6 }
 0x495   : > { %p1006_p11 = por %p1005_p10, %p1004_p5 }
 0x497   : > { %p1007_p12 = pnand %p1006_p11, %p1000_p4 }
 0x499   : > { %1010 = shalt.err (!%p1007_p12)
}
 0x49a   : > { %799 = dma.vmem_to_hbm [thread:$0]  (%p1417_p0), %s1329_s20, 16, %s1334_s21, %s545_s25  }
 0x49b PF: > { %p822_p13 = scmp.ge.s32.totalorder %s1057_s18, 2  ;;  %s569_s7 = sand.u32 1, %s1045_s15  }
 0x49c   : > { %p1418_p3 = scmp.ne.s32.totalorder %s1403_s6, 0  ;;  %s570_s10 = scalar_lea.sflag [#allocation4], %s569_s7 }
 0x49e   : > { %p816_p7 = pnand %p822_p13, %p1418_p3 }
 0x4a0   : > { %1040 = dma.done.wait (!%p816_p7), %s570_s10, 16  }
 0x4a1   : > { %1042 = vsyncadd (!%p816_p7), %s570_s10, 4294967280  ;;  %s1419_s13 = sld [smem:[#allocation15_spill]]  ;;  %s1420_s17 = sld [smem:[#allocation16_spill]] }
 0x4a2   : > { %p21_p9 = scmp.ge.s32.totalorder %s1115_s19, 6   ;;  %s1421_s15 = smov %s1049_s16 }
 0x4a3   : > { %s1423_s18 = smov %s1115_s19 }
 0x4a4   :  { %23 = sbr.rel (!%p21_p9) target bundleno = 10 (0xa), region = 109 }
 0x4a7   : > { %s1422_s16 = smov %s1419_s13 }
 0x4ab   :  { %574 = vsyncpa [#allocation3], 1 }
 0x4ac   :  { %576 = vsyncpa [#allocation3 + $0x1], 1 }
 0x4ad   :  { %577 = vsyncpa [#allocation6], 1 }
 0x4ae   :  { %579 = vsyncpa [#allocation6 + $0x1], 1 }
 0x4af   :  { %580 = vsyncpa [#allocation9], 1 }
 0x4b0   :  { %581 = vsyncpa [#allocation4], 1 }
 0x4b1   :  { %583 = vsyncpa [#allocation4 + $0x1], 1 }

</bundles_post_ra>
